<compile_context>
chip_gen: v7x
topology: tpu7x:2x2x1
jax: 0.10.0
libtpu: 0.0.40
codegen_flags: <defaults>
</compile_context>

<pallas_src>
import jax
import jax.numpy as jnp
from jax.experimental import pallas as pl
from jax.experimental.pallas import tpu as pltpu

_LANE = 128


def mlp_kernel(x_ref, w1_ref, b1_ref, w2_ref, b2_ref, w3t_ref, b3_ref, o_ref):
    x = x_ref[...]                                            # (TB, D_in) bf16

    # fc1 + ReLU   (MXU bf16 inputs, f32 accumulation; elementwise in f32)
    h1 = jnp.dot(x, w1_ref[...], preferred_element_type=jnp.float32)
    h1 = jnp.maximum(h1 + b1_ref[...], 0.0)                   # (TB, 32) f32

    # fc2 + ReLU
    h2 = jnp.dot(h1.astype(jnp.bfloat16), w2_ref[...],
                 preferred_element_type=jnp.float32)
    h2 = jnp.maximum(h2 + b2_ref[...], 0.0)                   # (TB, 16) f32

    # Output layer, computed transposed so the D_out=1 result is lane-dense:
    #   zT[0, b] = sum_h w3t[0, h] * h2[b, h]        -> (1, TB)
    zT = jax.lax.dot_general(
        w3t_ref[...], h2.astype(jnp.bfloat16),
        (((1,), (1,)), ((), ())),
        preferred_element_type=jnp.float32)                   # (1, TB) f32
    zT = zT + b3_ref[...]                                     # (1,1) lane-broadcast

    # sigmoid = 1 / (1 + exp(-z)); exp + approx reciprocal both go to the EUP.
    sig = pl.reciprocal(1.0 + jnp.exp(-zT), approx=True)
    o_ref[...] = sig.reshape(o_ref.shape).astype(o_ref.dtype)


def neural_net_forward(x, params, *, block_rows=1024, compute_dtype=jnp.bfloat16):
    """x: (B, D_in) f32.  params from init_params().  Returns (B, 1) f32."""
    w1, b1, w2, b2, w3t, b3 = params
    B, D_in = x.shape
    H1, H2 = w1.shape[1], w2.shape[1]

    # Pad batch to a multiple of 128 so every output tile is lane-dense.
    b_pad = pl.cdiv(B, _LANE) * _LANE
    if b_pad <= block_rows:
        tb = b_pad                       # single tile == full (padded) array
    else:
        tb = block_rows                  # multiple of 1024 keeps blocks aligned
        b_pad = pl.cdiv(B, tb) * tb
    grid = b_pad // tb

    xp = x if b_pad == B else jnp.pad(x, ((0, b_pad - B), (0, 0)))
    xp = xp.astype(compute_dtype)
    w1c = w1.astype(compute_dtype)
    w2c = w2.astype(compute_dtype)
    w3c = w3t.astype(compute_dtype)

    def const(shape):
        return pl.BlockSpec(shape, lambda i: (0,) * len(shape))

    out = pl.pallas_call(
        mlp_kernel,
        out_shape=jax.ShapeDtypeStruct((grid, 1, tb), jnp.float32),
        grid=(grid,),
        in_specs=[
            pl.BlockSpec((tb, D_in), lambda i: (i, 0)),   # x tile, pipelined
            const((D_in, H1)), const((1, H1)),            # fc1 (VMEM-resident)
            const((H1, H2)), const((1, H2)),              # fc2
            const((1, H2)), const((1, 1)),                # out layer (PyTorch (out,in) layout)
        ],
        out_specs=pl.BlockSpec((1, 1, tb), lambda i: (i, 0, 0)),
        compiler_params=pltpu.CompilerParams(
            dimension_semantics=("parallel",)),
    )(xp, w1c, b1, w2c, b2, w3c, b3)

    # (grid, 1, tb) row-major == padded batch order -> back to (B, 1).
    return out.reshape(b_pad, 1)[:B]


def init_params(key, input_size):
    """U(-1/sqrt(fan_in), 1/sqrt(fan_in)) like torch.nn.Linear.
    w1/w2 are stored as (in, out); the last layer is stored in PyTorch's
    (out, in) layout so the kernel emits a lane-dense (1, TB) result."""
    specs = [
        ((input_size, 32), input_size), ((1, 32), input_size),   # fc1
        ((32, 16), 32),                 ((1, 16), 32),            # fc2
        ((1, 16), 16),                  ((1, 1), 16),             # out (w stored (out,in))
    ]
    params = []
    for shape, fan_in in specs:
        key, sub = jax.random.split(key)
        bound = float(fan_in) ** -0.5
        params.append(jax.random.uniform(sub, shape, jnp.float32, -bound, bound))
    return tuple(params)


def reference_forward(x, params):
    w1, b1, w2, b2, w3t, b3 = params
    h1 = jnp.maximum(x @ w1 + b1, 0.0)
    h2 = jnp.maximum(h1 @ w2 + b2, 0.0)
    return jax.nn.sigmoid(h2 @ w3t.T + b3)


if __name__ == "__main__":
    key = jax.random.PRNGKey(0)
    key, kx, kx2 = jax.random.split(key, 3)

    batch, input_size = 8, 16
    x = jax.random.normal(kx, (batch, input_size), jnp.float32)
    params = init_params(key, input_size)

    # Small case (single tile).
    out = jax.block_until_ready(neural_net_forward(x, params))
    ref = reference_forward(x, params)
    assert out.shape == (batch, 1)
    assert jnp.allclose(out, ref, atol=2e-2, rtol=2e-2)

    # Multi-tile case exercising the padded, pipelined grid path.
    big_batch = 3000
    xb = jax.random.normal(kx2, (big_batch, input_size), jnp.float32)
    out_b = jax.block_until_ready(neural_net_forward(xb, params))
    ref_b = reference_forward(xb, params)
    assert out_b.shape == (big_batch, 1)
    assert jnp.allclose(out_b, ref_b, atol=2e-2, rtol=2e-2)

    print("KERNEL_OK")
</pallas_src>

<mosaic_0001>
module attributes {stable_mosaic.version = 11 : i64} {
  func.func @mlp_kernel(%arg0: i32, %arg1: memref<128x16xbf16, #tpu.memory_space<vmem>>, %arg2: memref<16x32xbf16, #tpu.memory_space<vmem>>, %arg3: memref<1x32xf32, #tpu.memory_space<vmem>>, %arg4: memref<32x16xbf16, #tpu.memory_space<vmem>>, %arg5: memref<1x16xf32, #tpu.memory_space<vmem>>, %arg6: memref<1x16xbf16, #tpu.memory_space<vmem>>, %arg7: memref<1x1xf32, #tpu.memory_space<vmem>>, %arg8: memref<1x1x128xf32, #tpu.memory_space<vmem>>) attributes {dimension_semantics = [#tpu.dimension_semantics<parallel>], iteration_bounds = array<i64: 1>, scalar_prefetch = 0 : i64, scratch_operands = 0 : i64, tpu.core_type = #tpu.core_type<tc>, window_params = [{transform_indices = @transform_0, window_bounds = array<i64: 128, 16>}, {pipeline_mode = #tpu.pipeline_mode<synchronous>, transform_indices = @transform_1, window_bounds = array<i64: 16, 32>}, {pipeline_mode = #tpu.pipeline_mode<synchronous>, transform_indices = @transform_2, window_bounds = array<i64: 1, 32>}, {pipeline_mode = #tpu.pipeline_mode<synchronous>, transform_indices = @transform_3, window_bounds = array<i64: 32, 16>}, {pipeline_mode = #tpu.pipeline_mode<synchronous>, transform_indices = @transform_4, window_bounds = array<i64: 1, 16>}, {pipeline_mode = #tpu.pipeline_mode<synchronous>, transform_indices = @transform_5, window_bounds = array<i64: 1, 16>}, {pipeline_mode = #tpu.pipeline_mode<synchronous>, transform_indices = @transform_6, window_bounds = array<i64: 1, 1>}, {transform_indices = @transform_7, window_bounds = array<i64: 1, 1, 128>}]} {
    %c0 = arith.constant 0 : index
    %c0_0 = arith.constant 0 : index
    %0 = vector.load %arg1[%c0, %c0_0] : memref<128x16xbf16, #tpu.memory_space<vmem>>, vector<128x16xbf16>
    %c0_1 = arith.constant 0 : index
    %c0_2 = arith.constant 0 : index
    %1 = vector.load %arg2[%c0_1, %c0_2] : memref<16x32xbf16, #tpu.memory_space<vmem>>, vector<16x32xbf16>
    %cst = arith.constant dense<0.000000e+00> : vector<128x32xf32>
    %2 = tpu.matmul %0, %1, %cst {dimension_numbers = #tpu.dot_dimension_numbers<[1], [0], [0], [1], [0, 0, 1, 1], [], []>} : vector<128x16xbf16>, vector<16x32xbf16>, vector<128x32xf32> -> vector<128x32xf32>
    %c0_3 = arith.constant 0 : index
    %c0_4 = arith.constant 0 : index
    %3 = vector.load %arg3[%c0_3, %c0_4] : memref<1x32xf32, #tpu.memory_space<vmem>>, vector<1x32xf32>
    %4 = vector.broadcast %3 : vector<1x32xf32> to vector<128x32xf32>
    %5 = arith.addf %2, %4 : vector<128x32xf32>
    %cst_5 = arith.constant 0.000000e+00 : f32
    %6 = vector.broadcast %cst_5 : f32 to vector<128x32xf32>
    %7 = arith.maximumf %5, %6 : vector<128x32xf32>
    %8 = arith.truncf %7 : vector<128x32xf32> to vector<128x32xbf16>
    %c0_6 = arith.constant 0 : index
    %c0_7 = arith.constant 0 : index
    %9 = vector.load %arg4[%c0_6, %c0_7] : memref<32x16xbf16, #tpu.memory_space<vmem>>, vector<32x16xbf16>
    %cst_8 = arith.constant dense<0.000000e+00> : vector<128x16xf32>
    %10 = tpu.matmul %8, %9, %cst_8 {dimension_numbers = #tpu.dot_dimension_numbers<[1], [0], [0], [1], [0, 0, 1, 1], [], []>} : vector<128x32xbf16>, vector<32x16xbf16>, vector<128x16xf32> -> vector<128x16xf32>
    %c0_9 = arith.constant 0 : index
    %c0_10 = arith.constant 0 : index
    %11 = vector.load %arg5[%c0_9, %c0_10] : memref<1x16xf32, #tpu.memory_space<vmem>>, vector<1x16xf32>
    %12 = vector.broadcast %11 : vector<1x16xf32> to vector<128x16xf32>
    %13 = arith.addf %10, %12 : vector<128x16xf32>
    %cst_11 = arith.constant 0.000000e+00 : f32
    %14 = vector.broadcast %cst_11 : f32 to vector<128x16xf32>
    %15 = arith.maximumf %13, %14 : vector<128x16xf32>
    %c0_12 = arith.constant 0 : index
    %c0_13 = arith.constant 0 : index
    %16 = vector.load %arg6[%c0_12, %c0_13] : memref<1x16xbf16, #tpu.memory_space<vmem>>, vector<1x16xbf16>
    %17 = arith.truncf %15 : vector<128x16xf32> to vector<128x16xbf16>
    %cst_14 = arith.constant dense<0.000000e+00> : vector<1x128xf32>
    %18 = tpu.matmul %16, %17, %cst_14 {dimension_numbers = #tpu.dot_dimension_numbers<[1], [1], [0], [0], [0, 0, 1, 0], [], []>} : vector<1x16xbf16>, vector<128x16xbf16>, vector<1x128xf32> -> vector<1x128xf32>
    %c0_15 = arith.constant 0 : index
    %c0_16 = arith.constant 0 : index
    %19 = vector.load %arg7[%c0_15, %c0_16] : memref<1x1xf32, #tpu.memory_space<vmem>>, vector<1x1xf32>
    %20 = vector.broadcast %19 : vector<1x1xf32> to vector<1x128xf32>
    %21 = arith.addf %18, %20 : vector<1x128xf32>
    %cst_17 = arith.constant 0.000000e+00 : f32
    %22 = vector.broadcast %cst_17 : f32 to vector<1x128xf32>
    %23 = arith.subf %22, %21 : vector<1x128xf32>
    %24 = math.exp %23 : vector<1x128xf32>
    %cst_18 = arith.constant 1.000000e+00 : f32
    %25 = vector.broadcast %cst_18 : f32 to vector<1x128xf32>
    %26 = arith.addf %25, %24 : vector<1x128xf32>
    %27 = tpu.reciprocal %26 {approx = true} : vector<1x128xf32> -> vector<1x128xf32>
    %28 = vector.shape_cast %27 : vector<1x128xf32> to vector<1x1x128xf32>
    %c0_19 = arith.constant 0 : index
    %c0_20 = arith.constant 0 : index
    %c0_21 = arith.constant 0 : index
    %29 = vector.load %arg8[%c0_19, %c0_20, %c0_21] : memref<1x1x128xf32, #tpu.memory_space<vmem>>, vector<1x1x128xf32>
    tpu.vector_store %arg8[%c0_19, %c0_20, %c0_21], %28 {strides = array<i32>} : memref<1x1x128xf32, #tpu.memory_space<vmem>>, vector<1x1x128xf32>,
    return
  }
  func.func @transform_0(%arg0: i32) -> (i32, i32) {
    %c0_i32 = arith.constant 0 : i32
    %c0_i32_0 = arith.constant 0 : i32
    return %arg0, %c0_i32 : i32, i32
  }
  func.func @transform_1(%arg0: i32) -> (i32, i32) {
    %c0_i32 = arith.constant 0 : i32
    %c0_i32_0 = arith.constant 0 : i32
    %c0_i32_1 = arith.constant 0 : i32
    return %c0_i32, %c0_i32_0 : i32, i32
  }
  func.func @transform_2(%arg0: i32) -> (i32, i32) {
    %c0_i32 = arith.constant 0 : i32
    %c0_i32_0 = arith.constant 0 : i32
    %c0_i32_1 = arith.constant 0 : i32
    return %c0_i32, %c0_i32_0 : i32, i32
  }
  func.func @transform_3(%arg0: i32) -> (i32, i32) {
    %c0_i32 = arith.constant 0 : i32
    %c0_i32_0 = arith.constant 0 : i32
    %c0_i32_1 = arith.constant 0 : i32
    return %c0_i32, %c0_i32_0 : i32, i32
  }
  func.func @transform_4(%arg0: i32) -> (i32, i32) {
    %c0_i32 = arith.constant 0 : i32
    %c0_i32_0 = arith.constant 0 : i32
    %c0_i32_1 = arith.constant 0 : i32
    return %c0_i32, %c0_i32_0 : i32, i32
  }
  func.func @transform_5(%arg0: i32) -> (i32, i32) {
    %c0_i32 = arith.constant 0 : i32
    %c0_i32_0 = arith.constant 0 : i32
    %c0_i32_1 = arith.constant 0 : i32
    return %c0_i32, %c0_i32_0 : i32, i32
  }
  func.func @transform_6(%arg0: i32) -> (i32, i32) {
    %c0_i32 = arith.constant 0 : i32
    %c0_i32_0 = arith.constant 0 : i32
    %c0_i32_1 = arith.constant 0 : i32
    return %c0_i32, %c0_i32_0 : i32, i32
  }
  func.func @transform_7(%arg0: i32) -> (i32, i32, i32) {
    %c0_i32 = arith.constant 0 : i32
    %c0_i32_0 = arith.constant 0 : i32
    %c0_i32_1 = arith.constant 0 : i32
    return %arg0, %c0_i32, %c0_i32_0 : i32, i32, i32
  }
}

</mosaic_0001>

<bundles_post_ra>
// kernel: tpu_custom_call.1
= control target key start
LH: loop header
LB: loop body
LE: loop exit
PB: predicated region body
PF: predicated region fallthrough
CT: control target
= control target key end

     0   :  { %s809_s0 = inlined_call_operand.vmem [shape: bf16[128,16], index: 0, kind: input, shape index: {}]   ;;  %s810_s1 = inlined_call_operand.vmem [shape: bf16[16,32], index: 1, kind: input, shape index: {}]   ;;  %s811_s2 = inlined_call_operand.vmem [shape: f32[1,32], index: 2, kind: input, shape index: {}]   ;;  %s812_s3 = inlined_call_operand.vmem [shape: bf16[32,16], index: 3, kind: input, shape index: {}]   ;;  %s813_s4 = inlined_call_operand.vmem [shape: f32[1,16], index: 4, kind: input, shape index: {}]   ;;  %s814_s5 = inlined_call_operand.vmem [shape: bf16[1,16], index: 5, kind: input, shape index: {}]   ;;  %s815_s6 = inlined_call_operand.<no memory space> [shape: f32[1,1], index: 6, kind: input, shape index: {}]   ;;  %s816_s7 = inlined_call_operand.hbm [shape: f32[1,1,128], index: 7, kind: output, shape index: {}]  }
   0x1   :  { %v12_v0 = vstv %s815_s6 }
   0x2   :  { %13 = vst [vmem:[#allocation2] sm:$0x1] %v12_v0 }
   0x3   :  { %v635_v1 = vld [vmem:[%s810_s1] sm:$0xff]   ;;  %vm101_vm0 = vcmask 130048   ;;  %v637_v3 = vld [vmem:[%s809_s0 + $0x8] sm:$0xff]   ;;  %v638_v4 = vld [vmem:[%s809_s0 + $0x10] sm:$0xff]  }
   0x4   :  { %v636_v2 = vld [vmem:[%s809_s0] sm:$0xff]   ;;  %572 = vmatprep.subr.bf16.mxu1 %v635_v1  ;;  %v639_v5 = vld [vmem:[%s809_s0 + $0x18] sm:$0xff]   ;;  %v645_v7 = vld [vmem:[%s812_s3 + $0x8] sm:$0xff]  }
   0x5   :  { %573 = vmatpush3.bf16.msra.mxu1 %v635_v1  ;;  %574 = vmatprep.mubr.msk.bf16.mxu1 %vm101_vm0, %v636_v2  ;;  %v644_v6 = vld [vmem:[%s812_s3] sm:$0xff]  }
   0x6   :  { %v640_v8 = vld [vmem:[%s809_s0 + $0x20] sm:$0xff]   ;;  %590 = vmatprep.subr.bf16.mxu1 %v644_v6 }
   0x8   :  { %575 = vmatmul.mubr.msk.bf16.vlgmr.msra.gmra.mrb[0].mxu1 %vm101_vm0, %v637_v3 }
   0x9   :  { %578 = vmatprep.mubr.msk.bf16.mxu1 %vm101_vm0, %v638_v4 }
   0xa   :  { %14 = vsyncpa [#allocation4], 0  ;;  %591 = vmatpush3.bf16.msra.mxu1 %v644_v6  ;;  %v641_v9 = vld [vmem:[%s809_s0 + $0x28] sm:$0xff]   ;;  %v642_v10 = vld [vmem:[%s809_s0 + $0x30] sm:$0xff]   ;;  %vm270_vm1 = vcmask 261120   ;;  %vm675_vm2 = vmmov 0  }
   0xb   :  { %592 = vmatprep.subr.bf16.mxu1 %v645_v7  ;;  %v643_v11 = vld [vmem:[%s809_s0 + $0x38] sm:$0xff]   ;;  %v514_v12 = vld [vmem:[%s811_s2] ss:$0 sm:$0xff]  ;;  %s677_s25 = smov [#allocation3]  }
   0xc   :  { %v417_v6 = vld [vmem:[#allocation2] sm:$0x1] }
   0xe   :  { %593 = vmatpush3.bf16.msra.mxu1 %v645_v7  ;;  %v676_v7 = vmov 0  }
   0xf   :  { %634 = vset.pattern.permute.xlu0 %v676_v7 }
  0x10   :  { %579 = vmatmul.mubr.msk.bf16.gmra.mrb[4].mxu1 %vm101_vm0, %v639_v5  ;;  %v674_v5 = vmov 0.0   ;;  %420 = vperm.xlu0 %634, %v417_v6  }
  0x11   :  { %582 = vmatprep.mubr.msk.bf16.mxu1 %vm101_vm0, %v640_v8  ;;  %610 = vmatprep.subr.bf16.mxu0 %v674_v5  ;;  %v532_v8 = vld [vmem:[%s813_s4] ss:$0 sm:$0xff] }
  0x12   :  { %626 = vmatprep.mubr.msk.bf16.mxu0 %vm675_vm2, %v674_v5 }
  0x18   :  { %583 = vmatmul.mubr.msk.bf16.gmra.mrb[8].mxu1 %vm101_vm0, %v641_v9 }
  0x19   :  { %586 = vmatprep.mubr.msk.bf16.mxu1 %vm101_vm0, %v642_v10 }
  0x20   :  { %587 = vmatmul.mubr.msk.bf16.gmra.mrb[12].mxu1 %vm101_vm0, %v643_v11 }
  0xdb   :  { %v576_v13 = vpop.f32.mrb[0].mxu1 }
  0xdc   :  { %v169_v14 = vadd.f32 %v576_v13, %v514_v12  ;;  %v160_v15 = vpop.f32.mrb[1].mxu1 }
  0xdd   :  { %v161_v16 = vadd.f32 %v514_v12, %v160_v15  ;;  %v577_v17 = vpop.f32.mrb[2].mxu1 }
  0xde   :  { %v172_v18 = vadd.f32 %v577_v17, %v514_v12  ;;  %v163_v19 = vpop.f32.mrb[3].mxu1  ;;  %v225_v21 = vmax.f32 %v169_v14, 0.0 }
  0xdf   :  { %v164_v20 = vadd.f32 %v514_v12, %v163_v19  ;;  %v223_v23 = vmax.f32 %v161_v16, 0.0 }
  0xe0   :  { %v226_v22 = vmax.f32 %v172_v18, 0.0 }
  0xe1   :  { %v224_v24 = vmax.f32 %v164_v20, 0.0 }
  0xe2   :  { %v240_v25 = vpack.c.bf16 %v226_v22, %v225_v21 }
  0xe3   :  { %v239_v26 = vpack.c.bf16 %v224_v24, %v223_v23  ;;  %v580_v27 = vpop.f32.mrb[4].mxu1 }
  0xe4   :  { %v185_v28 = vadd.f32 %v580_v27, %v514_v12  ;;  %v176_v29 = vpop.f32.mrb[5].mxu1 }
  0xe5   :  { %v177_v30 = vadd.f32 %v514_v12, %v176_v29  ;;  %594 = vmatprep.mubr.msk.bf16.mxu1 %vm270_vm1, %v239_v26  ;;  %v581_v31 = vpop.f32.mrb[6].mxu1 }
  0xe6   :  { %v229_v32 = vmax.f32 %v185_v28, 0.0  ;;  %v188_v33 = vadd.f32 %v581_v31, %v514_v12  ;;  %595 = vmatmul.mubr.msk.bf16.vlgmr.msra.gmra.mrb[16].mxu1 %vm270_vm1, %v240_v25  ;;  %v179_v34 = vpop.f32.mrb[7].mxu1 }
  0xe7   :  { %v227_v35 = vmax.f32 %v177_v30, 0.0  ;;  %v180_v36 = vadd.f32 %v514_v12, %v179_v34 }
  0xe8   :  { %v230_v37 = vmax.f32 %v188_v33, 0.0 }
  0xe9   :  { %v228_v38 = vmax.f32 %v180_v36, 0.0 }
  0xea   :  { %v242_v39 = vpack.c.bf16 %v230_v37, %v229_v32 }
  0xeb   :  { %v241_v40 = vpack.c.bf16 %v228_v38, %v227_v35  ;;  %v584_v41 = vpop.f32.mrb[8].mxu1 }
  0xec   :  { %v201_v42 = vadd.f32 %v584_v41, %v514_v12  ;;  %v192_v43 = vpop.f32.mrb[9].mxu1 }
  0xed   :  { %598 = vmatprep.mubr.msk.bf16.mxu1 %vm270_vm1, %v241_v40  ;;  %v193_v44 = vadd.f32 %v514_v12, %v192_v43  ;;  %v585_v45 = vpop.f32.mrb[10].mxu1 }
  0xee   :  { %599 = vmatmul.mubr.msk.bf16.gmra.mrb[20].mxu1 %vm270_vm1, %v242_v39  ;;  %v233_v46 = vmax.f32 %v201_v42, 0.0  ;;  %v204_v47 = vadd.f32 %v585_v45, %v514_v12  ;;  %v195_v48 = vpop.f32.mrb[11].mxu1 }
  0xef   :  { %v231_v49 = vmax.f32 %v193_v44, 0.0  ;;  %v196_v50 = vadd.f32 %v514_v12, %v195_v48 }
  0xf0   :  { %v234_v51 = vmax.f32 %v204_v47, 0.0 }
  0xf1   :  { %v232_v52 = vmax.f32 %v196_v50, 0.0 }
  0xf2   :  { %v244_v53 = vpack.c.bf16 %v234_v51, %v233_v46 }
  0xf3   :  { %v243_v54 = vpack.c.bf16 %v232_v52, %v231_v49  ;;  %v588_v55 = vpop.f32.mrb[12].mxu1 }
  0xf4   :  { %v217_v56 = vadd.f32 %v588_v55, %v514_v12  ;;  %v208_v57 = vpop.f32.mrb[13].mxu1 }
  0xf5   :  { %602 = vmatprep.mubr.msk.bf16.mxu1 %vm270_vm1, %v243_v54  ;;  %v209_v58 = vadd.f32 %v514_v12, %v208_v57  ;;  %v589_v59 = vpop.f32.mrb[14].mxu1 }
  0xf6   :  { %603 = vmatmul.mubr.msk.bf16.gmra.mrb[24].mxu1 %vm270_vm1, %v244_v53  ;;  %v237_v60 = vmax.f32 %v217_v56, 0.0  ;;  %v220_v61 = vadd.f32 %v589_v59, %v514_v12  ;;  %v211_v62 = vpop.f32.mrb[15].mxu1 }
  0xf7   :  { %v235_v63 = vmax.f32 %v209_v58, 0.0  ;;  %v212_v0 = vadd.f32 %v514_v12, %v211_v62 }
  0xf8   :  { %v238_v1 = vmax.f32 %v220_v61, 0.0 }
  0xf9   :  { %v236_v2 = vmax.f32 %v212_v0, 0.0 }
  0xfa   :  { %v246_v3 = vpack.c.bf16 %v238_v1, %v237_v60 }
  0xfb   :  { %v245_v4 = vpack.c.bf16 %v236_v2, %v235_v63 }
  0xfd   :  { %606 = vmatprep.mubr.msk.bf16.mxu1 %vm270_vm1, %v245_v4 }
  0xfe   :  { %607 = vmatmul.mubr.msk.bf16.gmra.mrb[28].mxu1 %vm270_vm1, %v246_v3 }
 0x1b9   :  { %v596_v9 = vpop.f32.mrb[16].mxu1 }
 0x1ba   :  { %v338_v10 = vadd.f32 %v596_v9, %v532_v8  ;;  %v329_v11 = vpop.f32.mrb[17].mxu1 }
 0x1bb   :  { %v330_v12 = vadd.f32 %v532_v8, %v329_v11  ;;  %v597_v13 = vpop.f32.mrb[18].mxu1  ;;  %v423_v11 = vlaneseq }
 0x1bc   :  { %v341_v14 = vadd.f32 %v597_v13, %v532_v8  ;;  %v332_v15 = vpop.f32.mrb[19].mxu1  ;;  %v394_v17 = vmax.f32 %v338_v10, 0.0  ;;  %v408_v10 = vld [vmem:[%s814_s5] sm:$0x1]  ;;  %s506_s5 = sshll.u32 %s677_s25, 4  ;;  %s507_s5 = int_to_ptr.vmem [resolvable:$true] %s506_s5 }
 0x1bd   :  { %v333_v16 = vadd.f32 %v532_v8, %v332_v15  ;;  %v392_v19 = vmax.f32 %v330_v12, 0.0  ;;  %v424_v12 = vshrl.u32 %v423_v11, 7  ;;  %s650_s26 = scalar_lea.vmem %s507_s5, 16  ;;  %s654_s27 = scalar_lea.vmem %s507_s5, 32 }
 0x1be   :  { %v395_v18 = vmax.f32 %v341_v14, 0.0  ;;  %v421_v14 = vpop.permute.xlu0 %420  ;;  %p651_p0 = scmp.ne.s32.totalorder %s507_s5, %s650_s26  ;;  %p655_p1 = scmp.lt.s32.totalorder %s507_s5, %s507_s5 }
 0x1bf   :  { %v393_v20 = vmax.f32 %v333_v16, 0.0  ;;  %v425_v13 = vsub.s32 0, %v424_v12  ;;  %p656_p2 = scmp.lt.s32.totalorder %s654_s27, %s650_s26 }
 0x1c0   :  { %v410_v21 = vpack.c.bf16 %v395_v18, %v394_v17 }
 0x1c1   :  { %v600_v22 = vpop.f32.mrb[20].mxu1  ;;  %v409_v23 = vpack.c.bf16 %v393_v20, %v392_v19  ;;  %v426_v15 = vrot.slane %v421_v14, %v425_v13  ;;  %p657_p3 = por %p656_p2, %p655_p1 }
 0x1c2   :  { %v354_v24 = vadd.f32 %v600_v22, %v532_v8  ;;  %v345_v25 = vpop.f32.mrb[21].mxu1  ;;  %v434_v41 = vsel %vm101_vm0, %v410_v21, 0 }
 0x1c3   :  { %v346_v26 = vadd.f32 %v532_v8, %v345_v25  ;;  %v601_v27 = vpop.f32.mrb[22].mxu1  ;;  %v431_v28 = vsel %vm101_vm0, %v409_v23, 0  ;;  %p658_p4 = pnand %p657_p3, %p651_p0 }
 0x1c4   :  { %v398_v29 = vmax.f32 %v354_v24, 0.0  ;;  %v357_v30 = vadd.f32 %v601_v27, %v532_v8  ;;  %611 = vmatpush3.bf16.xpose.msra.mxu0 %v431_v28  ;;  %v348_v31 = vpop.f32.mrb[23].mxu1 }
 0x1c5   :  { %v396_v32 = vmax.f32 %v346_v26, 0.0  ;;  %v349_v33 = vadd.f32 %v532_v8, %v348_v31  ;;  %612 = vmatprep.subr.bf16.mxu0 %v674_v5 }
 0x1c6   :  { %v399_v34 = vmax.f32 %v357_v30, 0.0 }
 0x1c7   :  { %v397_v35 = vmax.f32 %v349_v33, 0.0 }
 0x1c8   :  { %v412_v36 = vpack.c.bf16 %v399_v34, %v398_v29 }
 0x1c9   :  { %v411_v37 = vpack.c.bf16 %v397_v35, %v396_v32  ;;  %v604_v38 = vpop.f32.mrb[24].mxu1 }
 0x1ca   :  { %v370_v39 = vadd.f32 %v604_v38, %v532_v8  ;;  %v361_v40 = vpop.f32.mrb[25].mxu1  ;;  %v440_v4 = vsel %vm101_vm0, %v412_v36, 0 }
 0x1cb   :  { %v362_v42 = vadd.f32 %v532_v8, %v361_v40  ;;  %v605_v43 = vpop.f32.mrb[26].mxu1  ;;  %v437_v56 = vsel %vm101_vm0, %v411_v37, 0 }
 0x1cc   :  { %613 = vmatpush3.bf16.xpose.msra.mxu0 %v434_v41  ;;  %v402_v44 = vmax.f32 %v370_v39, 0.0  ;;  %v373_v45 = vadd.f32 %v605_v43, %v532_v8  ;;  %v364_v46 = vpop.f32.mrb[27].mxu1 }
 0x1cd   :  { %v400_v47 = vmax.f32 %v362_v42, 0.0  ;;  %614 = vmatprep.subr.bf16.mxu0 %v674_v5  ;;  %v365_v48 = vadd.f32 %v532_v8, %v364_v46 }
 0x1ce   :  { %v403_v49 = vmax.f32 %v373_v45, 0.0 }
 0x1cf   :  { %v401_v50 = vmax.f32 %v365_v48, 0.0 }
 0x1d0   :  { %v414_v51 = vpack.c.bf16 %v403_v49, %v402_v44 }
 0x1d1   :  { %v413_v52 = vpack.c.bf16 %v401_v50, %v400_v47  ;;  %v608_v53 = vpop.f32.mrb[28].mxu1 }
 0x1d2   :  { %v386_v54 = vadd.f32 %v608_v53, %v532_v8  ;;  %v377_v55 = vpop.f32.mrb[29].mxu1  ;;  %v446_v7 = vsel %vm101_vm0, %v414_v51, 0 }
 0x1d3   :  { %v378_v57 = vadd.f32 %v532_v8, %v377_v55  ;;  %v609_v58 = vpop.f32.mrb[30].mxu1  ;;  %v443_v6 = vsel %vm101_vm0, %v413_v52, 0 }
 0x1d4   :  { %615 = vmatpush3.bf16.xpose.msra.mxu0 %v437_v56  ;;  %v406_v59 = vmax.f32 %v386_v54, 0.0  ;;  %v389_v60 = vadd.f32 %v609_v58, %v532_v8  ;;  %v380_v61 = vpop.f32.mrb[31].mxu1 }
 0x1d5   :  { %616 = vmatprep.subr.bf16.mxu0 %v674_v5  ;;  %v404_v62 = vmax.f32 %v378_v57, 0.0  ;;  %v381_v63 = vadd.f32 %v532_v8, %v380_v61 }
 0x1d6   :  { %v407_v0 = vmax.f32 %v389_v60, 0.0 }
 0x1d7   :  { %v405_v1 = vmax.f32 %v381_v63, 0.0 }
 0x1d8   :  { %v416_v2 = vpack.c.bf16 %v407_v0, %v406_v59 }
 0x1d9   :  { %v415_v3 = vpack.c.bf16 %v405_v1, %v404_v62 }
 0x1da   :  { %v452_v9 = vsel %vm101_vm0, %v416_v2, 0 }
 0x1db   :  { %v449_v8 = vsel %vm101_vm0, %v415_v3, 0 }
 0x1dc   :  { %617 = vmatpush3.bf16.xpose.msra.mxu0 %v440_v4 }
 0x1dd   :  { %618 = vmatprep.subr.bf16.mxu0 %v674_v5 }
 0x1e4   :  { %619 = vmatpush3.bf16.xpose.msra.mxu0 %v443_v6 }
 0x1e5   :  { %620 = vmatprep.subr.bf16.mxu0 %v674_v5 }
 0x1ec   :  { %621 = vmatpush3.bf16.xpose.msra.mxu0 %v446_v7 }
 0x1ed   :  { %622 = vmatprep.subr.bf16.mxu0 %v674_v5 }
 0x1f4   :  { %623 = vmatpush3.bf16.xpose.msra.mxu0 %v449_v8 }
 0x1f5   :  { %624 = vmatprep.subr.bf16.mxu0 %v674_v5 }
 0x1fc   :  { %625 = vmatpush3.bf16.xpose.msra.mxu0 %v452_v9 }
 0x203   :  { %627 = vmatmul.mubr.msk.bf16.vlgmr.msra.gmra.mrb[0].mxu0 %vm101_vm0, %v408_v10 }
 0x2d6   :  { %v488_v16 = vpop.f32.mrb[0].mxu0 }
 0x2d7   :  { %v489_v17 = vadd.f32 %v488_v16, %v426_v15  ;;  %v628_v18 = vpop.f32.mrb[1].mxu0 }
 0x2d8   :  { %v491_v19 = vpop.f32.mrb[2].mxu0 }
 0x2d9   :  { %v494_v20 = vsub.f32 0.0, %v489_v17  ;;  %v629_v5 = vpop.f32.mrb[3].mxu0 }
 0x2db   :  { %v495_v21 = vmul.f32 1.442695, %v494_v20 }
 0x2dd   :  { %646 = vpow2.f32 %v495_v21 }
 0x2e7   :  { %v647_v22 = vpop.eup %646 }
 0x2e8   :  { %v497_v23 = vadd.f32 1.0, %v647_v22 }
 0x2ea   :  { %648 = vrcp.f32 %v497_v23 }
 0x2f4   :  { %v649_v24 = vpop.eup %648 }
 0x2f5   :  { %499 = vst [vmem:[#allocation3] sm:$0x1] %v649_v24 }
 0x2f6   :  { %661 = shalt.err (!%p658_p4)
}
 0x2f7   :  { %s662_s30 = scalar_lea.hbm %s816_s7, 16 }
 0x2f8   :  { %p663_p5 = scmp.ne.s32.totalorder %s816_s7, %s662_s30  ;;  %p666_p6 = scmp.lt.u32.totalorder %s662_s30, %s816_s7 }
 0x2fa   :  { %p668_p7 = pnand %p666_p6, %p663_p5 }
 0x2fc   :  { %671 = shalt.err (!%p668_p7)
}
 0x2fd   :  { %509 = dma.vmem_to_hbm [thread:$0]  %s507_s5, 16, %s816_s7, [#allocation4]  }
 0x2fe   :  { %672 = dma.done.wait [#allocation4], 16  }
 0x2ff   :  { %673 = vsyncadd [#allocation4], 4294967280 }
 0x300   :  { %513 = vsyncpa [#allocation4], 1 }

</bundles_post_ra>
